<compile_context>
chip_gen: v5e
topology: v5e:2x2
jax: 0.10.0
libtpu: 0.0.40
codegen_flags: <defaults>
</compile_context>

<pallas_src>
import functools

import jax
import jax.numpy as jnp
import numpy as np
from jax import lax
from jax.experimental import pallas as pl
from jax.experimental.pallas import tpu as pltpu


# ----------------------------------------------------------------------------
# Fused Pallas kernel: n_layers LSTM + linear head
# ----------------------------------------------------------------------------
def _cawa_fused_kernel(*refs, T, B, H, n_layers):
    """refs = [x, (wih_t, whh_t, bias) * n_layers, wlin, blin, out, hbuf, xbuf].

    x:      (T*B, F)    VMEM   time-major input, flattened over (T, B)
    wih_t:  (Din, 4H)   VMEM   weight_ih_l{l}.T            (pre-transposed)
    whh_t:  (H, 4H)     VMEM   weight_hh_l{l}.T            (pre-transposed)
    bias:   (1, 4H)     VMEM   b_ih + b_hh                 (pre-summed)
    wlin:   (1, H)      VMEM   linear weight
    blin:   (1, 1)      VMEM   linear bias
    out:    (N, 1)      VMEM   y_pred
    hbuf:   (T*B, H)    VMEM scratch  inter-layer hidden sequence (HBM-free)
    xbuf:   (T*B, 4H)   VMEM scratch  hoisted per-layer input projection
    PyTorch gate order: i, f, g, o.
    """
    x_ref = refs[0]
    layer_refs = refs[1:1 + 3 * n_layers]
    wlin_ref = refs[1 + 3 * n_layers]
    blin_ref = refs[2 + 3 * n_layers]
    out_ref = refs[3 + 3 * n_layers]
    hbuf = refs[4 + 3 * n_layers]
    xbuf = refs[5 + 3 * n_layers]

    # The head needs flat rows [(B-1)*T, B*T) of the last layer's (T*B, H)
    # output.  When T <= B those all live in the final-timestep h, which we
    # keep in vregs; only then can the last layer skip hbuf entirely.
    last_layer_needs_hbuf = T > B

    h_final = None
    for l in range(n_layers):
        wih_ref, whh_ref, b_ref = layer_refs[3 * l:3 * l + 3]
        whh = whh_ref[...]                                     # (H, 4H)
        bias = b_ref[...]                                      # (1, 4H)

        # Hoisted input projection: one (T*B, Din) x (Din, 4H) matmul/layer.
        src = x_ref[...] if l == 0 else hbuf[...]              # (T*B, Din)
        xbuf[...] = jnp.dot(src, wih_ref[...],
                            preferred_element_type=jnp.float32) + bias

        store_hidden = (l < n_layers - 1) or last_layer_needs_hbuf

        # reset_hidden_state(): zero initial (h, c).
        h0 = jnp.zeros((B, H), jnp.float32)
        c0 = jnp.zeros((B, H), jnp.float32)

        def step(t, carry, whh=whh, store_hidden=store_hidden):
            h, c = carry
            row = pl.multiple_of(t * B, B)                      # sublane-aligned
            # TODO(synk): hold whh in MXU weight regs across steps for large T.
            gates = xbuf[pl.ds(row, B), :] + jnp.dot(
                h, whh, preferred_element_type=jnp.float32)     # (B, 4H)
            sg = jax.nn.sigmoid(gates)                          # one 128-lane EUP pass
            i_g = sg[:, 0 * H:1 * H]
            f_g = sg[:, 1 * H:2 * H]
            o_g = sg[:, 3 * H:4 * H]
            g_g = jnp.tanh(gates[:, 2 * H:3 * H])               # only the g slice
            c = f_g * c + i_g * g_g
            h = o_g * jnp.tanh(c)
            if store_hidden:
                hbuf[pl.ds(row, B), :] = h
            return h, c

        # Bounded live ranges + LLO visibility; scales past tiny T.
        h_final, _ = lax.fori_loop(0, T, step, (h0, c0), unroll=True)
        # TODO(synk): nn.LSTM inter-layer dropout=0.5 applies only in training
        # mode; this implements the deterministic eval forward.

    # Head: lstm_out.view(seq_len, N, H)[-1] == flat rows [(B-1)*T, B*T).
    if last_layer_needs_hbuf:
        last = hbuf[(B - 1) * T: B * T, :]                      # (N, H) from VMEM
    else:
        last = h_final[B - T:, :]                               # (N, H) in vregs
    # (N, H) * (1, H) -> lane reduce: VPU + XLU, no extra kernel launch.
    out_ref[...] = (jnp.sum(last * wlin_ref[...], axis=-1, keepdims=True)
                    + blin_ref[...])
    # TODO(synk): for real N, emit lane-major (ceil(N/128), 128) and reshape in
    # the wrapper to avoid masked vst on a 1-wide output last dim.


# ----------------------------------------------------------------------------
# One-time parameter preprocessing (kept OUT of the per-call jitted forward)
# ----------------------------------------------------------------------------
def prepare_params(params, *, n_hidden, n_layers):
    """Fold transposes / bias sums / head reshapes once, eagerly, on device."""
    prepped = {}
    for l in range(n_layers):
        w_ih, w_hh, b_ih, b_hh = params[f"lstm_l{l}"]
        prepped[f"lstm_l{l}"] = (
            jnp.asarray(w_ih, jnp.float32).T,                          # (Din, 4H)
            jnp.asarray(w_hh, jnp.float32).T,                          # (H, 4H)
            (jnp.asarray(b_ih, jnp.float32)
             + jnp.asarray(b_hh, jnp.float32)).reshape(1, -1),         # (1, 4H)
        )
    w_lin, b_lin = params["linear"]
    prepped["linear"] = (jnp.asarray(w_lin, jnp.float32).reshape(1, n_hidden),
                         jnp.asarray(b_lin, jnp.float32).reshape(1, 1))
    return prepped


# ----------------------------------------------------------------------------
# Model wrapper (single pallas_call; no parameter massaging inside)
# ----------------------------------------------------------------------------
@functools.partial(jax.jit, static_argnames=("n_hidden", "seq_len", "n_layers"))
def cawa_forward(sequences, prepped, *, n_hidden, seq_len, n_layers):
    N = sequences.shape[0]
    T, B, H = N, seq_len, n_hidden
    # sequences.view(len(sequences), seq_len, -1), flattened time-major.
    # Contiguity-preserving reshape: free (metadata only).
    x_flat = sequences.reshape(T * B, -1).astype(jnp.float32)          # (T*B, F)

    args = [x_flat]
    for l in range(n_layers):
        args += list(prepped[f"lstm_l{l}"])
    args += list(prepped["linear"])

    kernel = functools.partial(_cawa_fused_kernel, T=T, B=B, H=H,
                               n_layers=n_layers)
    vmem = pl.BlockSpec(memory_space=pltpu.MemorySpace.VMEM)
    return pl.pallas_call(
        kernel,
        out_shape=jax.ShapeDtypeStruct((N, 1), jnp.float32),
        in_specs=[vmem] * len(args),
        out_specs=vmem,
        scratch_shapes=[pltpu.VMEM((T * B, H), jnp.float32),      # inter-layer h
                        pltpu.VMEM((T * B, 4 * H), jnp.float32)], # hoisted xproj
    )(*args)


# ----------------------------------------------------------------------------
# Deterministic parameter init (PyTorch-style U(-1/sqrt(H), 1/sqrt(H)))
# ----------------------------------------------------------------------------
def init_params(key, n_features, n_hidden, n_layers):
    params = {}
    k = 1.0 / np.sqrt(n_hidden)
    keys = jax.random.split(key, 4 * n_layers + 2)
    idx = 0
    for l in range(n_layers):
        din = n_features if l == 0 else n_hidden
        w_ih = jax.random.uniform(keys[idx], (4 * n_hidden, din), jnp.float32, -k, k); idx += 1
        w_hh = jax.random.uniform(keys[idx], (4 * n_hidden, n_hidden), jnp.float32, -k, k); idx += 1
        b_ih = jax.random.uniform(keys[idx], (4 * n_hidden,), jnp.float32, -k, k); idx += 1
        b_hh = jax.random.uniform(keys[idx], (4 * n_hidden,), jnp.float32, -k, k); idx += 1
        params[f"lstm_l{l}"] = (w_ih, w_hh, b_ih, b_hh)
    w_lin = jax.random.uniform(keys[idx], (1, n_hidden), jnp.float32, -k, k); idx += 1
    b_lin = jax.random.uniform(keys[idx], (1,), jnp.float32, -k, k)
    params["linear"] = (w_lin, b_lin)
    return params


# ----------------------------------------------------------------------------
# Pure-numpy reference (mirrors torch.nn.LSTM eval forward)
# ----------------------------------------------------------------------------
def reference_forward(sequences, params, n_hidden, seq_len, n_layers):
    def sig(z):
        return 1.0 / (1.0 + np.exp(-z))

    N = sequences.shape[0]
    h_seq = np.asarray(sequences, np.float32).reshape(N, seq_len, -1)
    H = n_hidden
    for l in range(n_layers):
        w_ih, w_hh, b_ih, b_hh = [np.asarray(p) for p in params[f"lstm_l{l}"]]
        T, B = h_seq.shape[0], h_seq.shape[1]
        h = np.zeros((B, H), np.float32)
        c = np.zeros((B, H), np.float32)
        outs = []
        for t in range(T):
            gates = h_seq[t] @ w_ih.T + h @ w_hh.T + b_ih + b_hh
            i = sig(gates[:, :H]); f = sig(gates[:, H:2 * H])
            g = np.tanh(gates[:, 2 * H:3 * H]); o = sig(gates[:, 3 * H:])
            c = f * c + i * g
            h = o * np.tanh(c)
            outs.append(h)
        h_seq = np.stack(outs)
    last = h_seq.reshape(seq_len, N, n_hidden)[-1]
    w_lin, b_lin = [np.asarray(p) for p in params["linear"]]
    return last @ w_lin.T + b_lin


if __name__ == "__main__":
    N, seq_len, n_features, n_hidden, n_layers = 2, 8, 4, 32, 2

    key = jax.random.PRNGKey(0)
    k_seq, k_par = jax.random.split(key)
    sequences = jax.random.normal(k_seq, (N, seq_len, n_features), jnp.float32)
    params = init_params(k_par, n_features, n_hidden, n_layers)

    # One-time parameter preprocessing (outside the per-call forward).
    prepped = prepare_params(params, n_hidden=n_hidden, n_layers=n_layers)
    prepped = jax.block_until_ready(prepped)

    y = cawa_forward(sequences, prepped,
                     n_hidden=n_hidden, seq_len=seq_len, n_layers=n_layers)
    y = jax.block_until_ready(y)

    y_ref = reference_forward(sequences, params, n_hidden, seq_len, n_layers)
    assert y.shape == (N, 1), y.shape
    np.testing.assert_allclose(np.asarray(y), y_ref, rtol=1e-4, atol=1e-4)
    print("KERNEL_OK")
</pallas_src>

<mosaic_0001>
module attributes {stable_mosaic.version = 11 : i64} {
  func.func @_cawa_fused_kernel(%arg0: memref<16x4xf32, #tpu.memory_space<vmem>>, %arg1: memref<4x128xf32, #tpu.memory_space<vmem>>, %arg2: memref<32x128xf32, #tpu.memory_space<vmem>>, %arg3: memref<1x128xf32, #tpu.memory_space<vmem>>, %arg4: memref<32x128xf32, #tpu.memory_space<vmem>>, %arg5: memref<32x128xf32, #tpu.memory_space<vmem>>, %arg6: memref<1x128xf32, #tpu.memory_space<vmem>>, %arg7: memref<1x32xf32, #tpu.memory_space<vmem>>, %arg8: memref<1x1xf32, #tpu.memory_space<vmem>>, %arg9: memref<2x1xf32, #tpu.memory_space<vmem>>, %arg10: memref<16x32xf32, #tpu.memory_space<vmem>>, %arg11: memref<16x128xf32, #tpu.memory_space<vmem>>) attributes {dimension_semantics = [], scalar_prefetch = 0 : i64, scratch_operands = 2 : i64, tpu.core_type = #tpu.core_type<tc>} {
    %c0 = arith.constant 0 : index
    %c0_0 = arith.constant 0 : index
    %0 = vector.load %arg2[%c0, %c0_0] : memref<32x128xf32, #tpu.memory_space<vmem>>, vector<32x128xf32>
    %c0_1 = arith.constant 0 : index
    %c0_2 = arith.constant 0 : index
    %1 = vector.load %arg3[%c0_1, %c0_2] : memref<1x128xf32, #tpu.memory_space<vmem>>, vector<1x128xf32>
    %c0_3 = arith.constant 0 : index
    %c0_4 = arith.constant 0 : index
    %2 = vector.load %arg0[%c0_3, %c0_4] : memref<16x4xf32, #tpu.memory_space<vmem>>, vector<16x4xf32>
    %c0_5 = arith.constant 0 : index
    %c0_6 = arith.constant 0 : index
    %3 = vector.load %arg1[%c0_5, %c0_6] : memref<4x128xf32, #tpu.memory_space<vmem>>, vector<4x128xf32>
    %cst = arith.constant dense<0.000000e+00> : vector<16x128xf32>
    %4 = tpu.matmul %2, %3, %cst {dimension_numbers = #tpu.dot_dimension_numbers<[1], [0], [0], [1], [0, 0, 1, 1], [], []>} : vector<16x4xf32>, vector<4x128xf32>, vector<16x128xf32> -> vector<16x128xf32>
    %5 = vector.broadcast %1 : vector<1x128xf32> to vector<16x128xf32>
    %6 = arith.addf %4, %5 : vector<16x128xf32>
    %c0_7 = arith.constant 0 : index
    %c0_8 = arith.constant 0 : index
    %7 = vector.load %arg11[%c0_7, %c0_8] : memref<16x128xf32, #tpu.memory_space<vmem>>, vector<16x128xf32>
    tpu.vector_store %arg11[%c0_7, %c0_8], %6 {strides = array<i32>} : memref<16x128xf32, #tpu.memory_space<vmem>>, vector<16x128xf32>,
    %cst_9 = arith.constant 0.000000e+00 : f32
    %8 = vector.broadcast %cst_9 : f32 to vector<8x32xf32>
    %cst_10 = arith.constant 0.000000e+00 : f32
    %9 = vector.broadcast %cst_10 : f32 to vector<8x32xf32>
    %c0_i32 = arith.constant 0 : i32
    %c8_i32 = arith.constant 8 : i32
    %10 = arith.muli %c0_i32, %c8_i32 : i32
    %11 = tpu.assume_multiple %10, 8 : i32
    %12 = arith.index_cast %11 : i32 to index
    %c0_11 = arith.constant 0 : index
    %13 = vector.load %arg11[%12, %c0_11] : memref<16x128xf32, #tpu.memory_space<vmem>>, vector<8x128xf32>
    %cst_12 = arith.constant dense<0.000000e+00> : vector<8x128xf32>
    %14 = tpu.matmul %8, %0, %cst_12 {dimension_numbers = #tpu.dot_dimension_numbers<[1], [0], [0], [1], [0, 0, 1, 1], [], []>} : vector<8x32xf32>, vector<32x128xf32>, vector<8x128xf32> -> vector<8x128xf32>
    %15 = arith.addf %13, %14 : vector<8x128xf32>
    %16 = arith.negf %15 : vector<8x128xf32>
    %17 = math.exp %16 : vector<8x128xf32>
    %cst_13 = arith.constant 1.000000e+00 : f32
    %18 = vector.broadcast %cst_13 : f32 to vector<8x128xf32>
    %19 = arith.addf %18, %17 : vector<8x128xf32>
    %20 = arith.divf %18, %19 : vector<8x128xf32>
    %21 = vector.extract_strided_slice %20 {offsets = [0, 0], sizes = [8, 32], strides = [1, 1]} : vector<8x128xf32> to vector<8x32xf32>
    %22 = vector.extract_strided_slice %20 {offsets = [0, 32], sizes = [8, 32], strides = [1, 1]} : vector<8x128xf32> to vector<8x32xf32>
    %23 = vector.extract_strided_slice %20 {offsets = [0, 96], sizes = [8, 32], strides = [1, 1]} : vector<8x128xf32> to vector<8x32xf32>
    %24 = vector.extract_strided_slice %15 {offsets = [0, 64], sizes = [8, 32], strides = [1, 1]} : vector<8x128xf32> to vector<8x32xf32>
    %25 = math.tanh %24 : vector<8x32xf32>
    %26 = arith.mulf %22, %9 : vector<8x32xf32>
    %27 = arith.mulf %21, %25 : vector<8x32xf32>
    %28 = arith.addf %26, %27 : vector<8x32xf32>
    %29 = math.tanh %28 : vector<8x32xf32>
    %30 = arith.mulf %23, %29 : vector<8x32xf32>
    %31 = arith.index_cast %11 : i32 to index
    %c0_14 = arith.constant 0 : index
    %32 = vector.load %arg10[%31, %c0_14] : memref<16x32xf32, #tpu.memory_space<vmem>>, vector<8x32xf32>
    tpu.vector_store %arg10[%31, %c0_14], %30 {strides = array<i32>} : memref<16x32xf32, #tpu.memory_space<vmem>>, vector<8x32xf32>,
    %c1_i32 = arith.constant 1 : i32
    %c8_i32_15 = arith.constant 8 : i32
    %33 = arith.muli %c1_i32, %c8_i32_15 : i32
    %34 = tpu.assume_multiple %33, 8 : i32
    %35 = arith.index_cast %34 : i32 to index
    %c0_16 = arith.constant 0 : index
    %36 = vector.load %arg11[%35, %c0_16] : memref<16x128xf32, #tpu.memory_space<vmem>>, vector<8x128xf32>
    %cst_17 = arith.constant dense<0.000000e+00> : vector<8x128xf32>
    %37 = tpu.matmul %30, %0, %cst_17 {dimension_numbers = #tpu.dot_dimension_numbers<[1], [0], [0], [1], [0, 0, 1, 1], [], []>} : vector<8x32xf32>, vector<32x128xf32>, vector<8x128xf32> -> vector<8x128xf32>
    %38 = arith.addf %36, %37 : vector<8x128xf32>
    %39 = arith.negf %38 : vector<8x128xf32>
    %40 = math.exp %39 : vector<8x128xf32>
    %cst_18 = arith.constant 1.000000e+00 : f32
    %41 = vector.broadcast %cst_18 : f32 to vector<8x128xf32>
    %42 = arith.addf %41, %40 : vector<8x128xf32>
    %43 = arith.divf %41, %42 : vector<8x128xf32>
    %44 = vector.extract_strided_slice %43 {offsets = [0, 0], sizes = [8, 32], strides = [1, 1]} : vector<8x128xf32> to vector<8x32xf32>
    %45 = vector.extract_strided_slice %43 {offsets = [0, 32], sizes = [8, 32], strides = [1, 1]} : vector<8x128xf32> to vector<8x32xf32>
    %46 = vector.extract_strided_slice %43 {offsets = [0, 96], sizes = [8, 32], strides = [1, 1]} : vector<8x128xf32> to vector<8x32xf32>
    %47 = vector.extract_strided_slice %38 {offsets = [0, 64], sizes = [8, 32], strides = [1, 1]} : vector<8x128xf32> to vector<8x32xf32>
    %48 = math.tanh %47 : vector<8x32xf32>
    %49 = arith.mulf %45, %28 : vector<8x32xf32>
    %50 = arith.mulf %44, %48 : vector<8x32xf32>
    %51 = arith.addf %49, %50 : vector<8x32xf32>
    %52 = math.tanh %51 : vector<8x32xf32>
    %53 = arith.mulf %46, %52 : vector<8x32xf32>
    %54 = arith.index_cast %34 : i32 to index
    %c0_19 = arith.constant 0 : index
    %55 = vector.load %arg10[%54, %c0_19] : memref<16x32xf32, #tpu.memory_space<vmem>>, vector<8x32xf32>
    tpu.vector_store %arg10[%54, %c0_19], %53 {strides = array<i32>} : memref<16x32xf32, #tpu.memory_space<vmem>>, vector<8x32xf32>,
    %c2_i32 = arith.constant 2 : i32
    %c0_20 = arith.constant 0 : index
    %c0_21 = arith.constant 0 : index
    %56 = vector.load %arg5[%c0_20, %c0_21] : memref<32x128xf32, #tpu.memory_space<vmem>>, vector<32x128xf32>
    %c0_22 = arith.constant 0 : index
    %c0_23 = arith.constant 0 : index
    %57 = vector.load %arg6[%c0_22, %c0_23] : memref<1x128xf32, #tpu.memory_space<vmem>>, vector<1x128xf32>
    %c0_24 = arith.constant 0 : index
    %c0_25 = arith.constant 0 : index
    %58 = vector.load %arg10[%c0_24, %c0_25] : memref<16x32xf32, #tpu.memory_space<vmem>>, vector<16x32xf32>
    %c0_26 = arith.constant 0 : index
    %c0_27 = arith.constant 0 : index
    %59 = vector.load %arg4[%c0_26, %c0_27] : memref<32x128xf32, #tpu.memory_space<vmem>>, vector<32x128xf32>
    %cst_28 = arith.constant dense<0.000000e+00> : vector<16x128xf32>
    %60 = tpu.matmul %58, %59, %cst_28 {dimension_numbers = #tpu.dot_dimension_numbers<[1], [0], [0], [1], [0, 0, 1, 1], [], []>} : vector<16x32xf32>, vector<32x128xf32>, vector<16x128xf32> -> vector<16x128xf32>
    %61 = vector.broadcast %57 : vector<1x128xf32> to vector<16x128xf32>
    %62 = arith.addf %60, %61 : vector<16x128xf32>
    %c0_29 = arith.constant 0 : index
    %c0_30 = arith.constant 0 : index
    %63 = vector.load %arg11[%c0_29, %c0_30] : memref<16x128xf32, #tpu.memory_space<vmem>>, vector<16x128xf32>
    tpu.vector_store %arg11[%c0_29, %c0_30], %62 {strides = array<i32>} : memref<16x128xf32, #tpu.memory_space<vmem>>, vector<16x128xf32>,
    %cst_31 = arith.constant 0.000000e+00 : f32
    %64 = vector.broadcast %cst_31 : f32 to vector<8x32xf32>
    %cst_32 = arith.constant 0.000000e+00 : f32
    %65 = vector.broadcast %cst_32 : f32 to vector<8x32xf32>
    %c0_i32_33 = arith.constant 0 : i32
    %c8_i32_34 = arith.constant 8 : i32
    %66 = arith.muli %c0_i32_33, %c8_i32_34 : i32
    %67 = tpu.assume_multiple %66, 8 : i32
    %68 = arith.index_cast %67 : i32 to index
    %c0_35 = arith.constant 0 : index
    %69 = vector.load %arg11[%68, %c0_35] : memref<16x128xf32, #tpu.memory_space<vmem>>, vector<8x128xf32>
    %cst_36 = arith.constant dense<0.000000e+00> : vector<8x128xf32>
    %70 = tpu.matmul %64, %56, %cst_36 {dimension_numbers = #tpu.dot_dimension_numbers<[1], [0], [0], [1], [0, 0, 1, 1], [], []>} : vector<8x32xf32>, vector<32x128xf32>, vector<8x128xf32> -> vector<8x128xf32>
    %71 = arith.addf %69, %70 : vector<8x128xf32>
    %72 = arith.negf %71 : vector<8x128xf32>
    %73 = math.exp %72 : vector<8x128xf32>
    %cst_37 = arith.constant 1.000000e+00 : f32
    %74 = vector.broadcast %cst_37 : f32 to vector<8x128xf32>
    %75 = arith.addf %74, %73 : vector<8x128xf32>
    %76 = arith.divf %74, %75 : vector<8x128xf32>
    %77 = vector.extract_strided_slice %76 {offsets = [0, 0], sizes = [8, 32], strides = [1, 1]} : vector<8x128xf32> to vector<8x32xf32>
    %78 = vector.extract_strided_slice %76 {offsets = [0, 32], sizes = [8, 32], strides = [1, 1]} : vector<8x128xf32> to vector<8x32xf32>
    %79 = vector.extract_strided_slice %76 {offsets = [0, 96], sizes = [8, 32], strides = [1, 1]} : vector<8x128xf32> to vector<8x32xf32>
    %80 = vector.extract_strided_slice %71 {offsets = [0, 64], sizes = [8, 32], strides = [1, 1]} : vector<8x128xf32> to vector<8x32xf32>
    %81 = math.tanh %80 : vector<8x32xf32>
    %82 = arith.mulf %78, %65 : vector<8x32xf32>
    %83 = arith.mulf %77, %81 : vector<8x32xf32>
    %84 = arith.addf %82, %83 : vector<8x32xf32>
    %85 = math.tanh %84 : vector<8x32xf32>
    %86 = arith.mulf %79, %85 : vector<8x32xf32>
    %c1_i32_38 = arith.constant 1 : i32
    %c8_i32_39 = arith.constant 8 : i32
    %87 = arith.muli %c1_i32_38, %c8_i32_39 : i32
    %88 = tpu.assume_multiple %87, 8 : i32
    %89 = arith.index_cast %88 : i32 to index
    %c0_40 = arith.constant 0 : index
    %90 = vector.load %arg11[%89, %c0_40] : memref<16x128xf32, #tpu.memory_space<vmem>>, vector<8x128xf32>
    %cst_41 = arith.constant dense<0.000000e+00> : vector<8x128xf32>
    %91 = tpu.matmul %86, %56, %cst_41 {dimension_numbers = #tpu.dot_dimension_numbers<[1], [0], [0], [1], [0, 0, 1, 1], [], []>} : vector<8x32xf32>, vector<32x128xf32>, vector<8x128xf32> -> vector<8x128xf32>
    %92 = arith.addf %90, %91 : vector<8x128xf32>
    %93 = arith.negf %92 : vector<8x128xf32>
    %94 = math.exp %93 : vector<8x128xf32>
    %cst_42 = arith.constant 1.000000e+00 : f32
    %95 = vector.broadcast %cst_42 : f32 to vector<8x128xf32>
    %96 = arith.addf %95, %94 : vector<8x128xf32>
    %97 = arith.divf %95, %96 : vector<8x128xf32>
    %98 = vector.extract_strided_slice %97 {offsets = [0, 0], sizes = [8, 32], strides = [1, 1]} : vector<8x128xf32> to vector<8x32xf32>
    %99 = vector.extract_strided_slice %97 {offsets = [0, 32], sizes = [8, 32], strides = [1, 1]} : vector<8x128xf32> to vector<8x32xf32>
    %100 = vector.extract_strided_slice %97 {offsets = [0, 96], sizes = [8, 32], strides = [1, 1]} : vector<8x128xf32> to vector<8x32xf32>
    %101 = vector.extract_strided_slice %92 {offsets = [0, 64], sizes = [8, 32], strides = [1, 1]} : vector<8x128xf32> to vector<8x32xf32>
    %102 = math.tanh %101 : vector<8x32xf32>
    %103 = arith.mulf %99, %84 : vector<8x32xf32>
    %104 = arith.mulf %98, %102 : vector<8x32xf32>
    %105 = arith.addf %103, %104 : vector<8x32xf32>
    %106 = math.tanh %105 : vector<8x32xf32>
    %107 = arith.mulf %100, %106 : vector<8x32xf32>
    %c2_i32_43 = arith.constant 2 : i32
    %108 = vector.extract_strided_slice %107 {offsets = [6, 0], sizes = [2, 32], strides = [1, 1]} : vector<8x32xf32> to vector<2x32xf32>
    %c0_44 = arith.constant 0 : index
    %c0_45 = arith.constant 0 : index
    %109 = vector.load %arg7[%c0_44, %c0_45] : memref<1x32xf32, #tpu.memory_space<vmem>>, vector<1x32xf32>
    %110 = vector.broadcast %109 : vector<1x32xf32> to vector<2x32xf32>
    %111 = arith.mulf %108, %110 : vector<2x32xf32>
    %cst_46 = arith.constant dense<0.000000e+00> : vector<2xf32>
    %112 = vector.multi_reduction <add>, %111, %cst_46 [1] : vector<2x32xf32> to vector<2xf32>
    %113 = vector.shape_cast %112 : vector<2xf32> to vector<2x1xf32>
    %c0_47 = arith.constant 0 : index
    %c0_48 = arith.constant 0 : index
    %114 = vector.load %arg8[%c0_47, %c0_48] : memref<1x1xf32, #tpu.memory_space<vmem>>, vector<1x1xf32>
    %115 = vector.broadcast %114 : vector<1x1xf32> to vector<2x1xf32>
    %116 = arith.addf %113, %115 : vector<2x1xf32>
    %c0_49 = arith.constant 0 : index
    %c0_50 = arith.constant 0 : index
    %117 = vector.load %arg9[%c0_49, %c0_50] : memref<2x1xf32, #tpu.memory_space<vmem>>, vector<2x1xf32>
    tpu.vector_store %arg9[%c0_49, %c0_50], %116 {strides = array<i32>} : memref<2x1xf32, #tpu.memory_space<vmem>>, vector<2x1xf32>,
    return
  }
}

</mosaic_0001>

<bundles_post_ra>
// kernel: cawa_forward.1
= control target key start
LH: loop header
LB: loop body
LE: loop exit
PB: predicated region body
PF: predicated region fallthrough
CT: control target
= control target key end

     0   :  { %s811_s0 = inlined_call_operand.vmem [shape: f32[16,4], index: 0, kind: input, shape index: {}]   ;;  %s812_s1 = inlined_call_operand.hbm [shape: f32[4,128], index: 1, kind: input, shape index: {}]   ;;  %s813_s2 = inlined_call_operand.hbm [shape: f32[32,128], index: 2, kind: input, shape index: {}]   ;;  %s814_s3 = inlined_call_operand.hbm [shape: f32[1,128], index: 3, kind: input, shape index: {}]   ;;  %s815_s4 = inlined_call_operand.hbm [shape: f32[32,128], index: 4, kind: input, shape index: {}]   ;;  %s816_s5 = inlined_call_operand.vmem [shape: f32[32,128], index: 5, kind: input, shape index: {}]   ;;  %s817_s6 = inlined_call_operand.vmem [shape: f32[1,128], index: 6, kind: input, shape index: {}]   ;;  %s818_s7 = inlined_call_operand.hbm [shape: f32[1,32], index: 7, kind: input, shape index: {}]   ;;  %s819_s8 = inlined_call_operand.<no memory space> [shape: f32[1,1], index: 8, kind: input, shape index: {}]   ;;  %s820_s9 = inlined_call_operand.vmem [shape: f32[2,1], index: 9, kind: output, shape index: {}]  }
   0x1   :  { %v14_v0 = vstv %s819_s8 }
   0x2   :  { %15 = vst [vmem:[#allocation4] sm:$0x1] %v14_v0 }
   0x3   :  { %16 = vsyncpa [#allocation6], 0 }
   0x4   :  { %17 = vsyncpa [#allocation8], 0  ;;  %s36_s13 = sshll.u32 %s813_s2, 4  ;;  %s37_s13 = int_to_ptr.hbm [resolvable:$true] %s36_s13 }
   0x5   :  { %18 = vsyncpa [#allocation11], 0  ;;  %s670_s14 = smov [#allocation7]   ;;  %s60_s18 = sshll.u32 %s815_s4, 4  ;;  %s61_s18 = int_to_ptr.hbm [resolvable:$true] %s60_s18 }
   0x6   :  { %s38_s15 = sshll.u32 %s670_s14, 4  ;;  %s671_s19 = smov 128   ;;  %s39_s15 = int_to_ptr.vmem [resolvable:$true] %s38_s15 }
   0x7   :  { %s672_s20 = smov 8   ;;  %s673_s8 = smov [#allocation10]  }
   0x8   :  { %44 = dma.hbm_to_vmem [thread:$0]  %s37_s13, 512, %s39_s15, [#allocation8], %s671_s19, %s671_s19, %s672_s20  }
   0x9   :  { %s62_s21 = sshll.u32 %s673_s8, 4  ;;  %s26_s24 = sshll.u32 %s812_s1, 4  ;;  %s63_s21 = int_to_ptr.vmem [resolvable:$true] %s62_s21  ;;  %s27_s24 = int_to_ptr.hbm [resolvable:$true] %s26_s24 }
   0xa   :  { %68 = dma.hbm_to_vmem [thread:$0]  %s61_s18, 512, %s63_s21, [#allocation11], %s671_s19, %s671_s19, %s672_s20  }
   0xb   :  { %s50_s26 = sshll.u32 %s814_s3, 4  ;;  %s674_s27 = smov [#allocation5]   ;;  %s51_s26 = int_to_ptr.hbm [resolvable:$true] %s50_s26 }
   0xc   :  { %s28_s28 = sshll.u32 %s674_s27, 4  ;;  %s675_s4 = smov [#allocation9]   ;;  %s29_s28 = int_to_ptr.vmem [resolvable:$true] %s28_s28 }
   0xd   :  { %31 = dma.hbm_to_vmem [thread:$0]  %s27_s24, 64, %s29_s28, [#allocation6]  }
   0xe   :  { %s52_s29 = sshll.u32 %s675_s4, 4  ;;  %s78_s11 = sshll.u32 %s818_s7, 4  ;;  %s53_s29 = int_to_ptr.vmem [resolvable:$true] %s52_s29  ;;  %s79_s11 = int_to_ptr.hbm [resolvable:$true] %s78_s11 }
   0xf   :  { %55 = dma.hbm_to_vmem [thread:$0]  %s51_s26, 16, %s53_s29, [#allocation8]  }
  0x10   :  { %s676_s1 = smov [#allocation12]  }
  0x11   :  { %s80_s12 = sshll.u32 %s676_s1, 4  ;;  %s81_s12 = int_to_ptr.vmem [resolvable:$true] %s80_s12 }
  0x12   :  { %83 = dma.hbm_to_vmem [thread:$0]  %s79_s11, 16, %s81_s12, [#allocation11]  }
  0x13   :  { %664 = dma.done.wait [#allocation6], 64  }
  0x14   :  { %665 = vsyncadd [#allocation6], 4294967232 }
  0x15   :  { %666 = dma.done.wait [#allocation8], 528  }
  0x16   :  { %667 = vsyncadd [#allocation8], 4294966768 }
  0x17   :  { %668 = dma.done.wait [#allocation11], 528  }
  0x18   :  { %669 = vsyncadd [#allocation11], 4294966768  ;;  %vm124_vm0 = vcmask 1043456   ;;  %vm117_vm1 = vcmask 31744   ;;  %v109_v1 = vld [vmem:[#allocation7 + $0x18] sm:$0xff]  ;;  %v108_v2 = vld [vmem:[#allocation7 + $0x10] sm:$0xff] }
  0x19   :  { %v113_v3 = vld [vmem:[#allocation5] sm:$0xf]  ;;  %170 = vmatpush.msra.mxu1 %v109_v1  ;;  %v111_v4 = vld [vmem:[%s811_s0] sm:$0xff]  ;;  %237 = vmatpush.msra.mxu2 %v109_v1  ;;  %v106_v6 = vld [vmem:[#allocation7] sm:$0xff]  ;;  %v677_v7 = vmov 0.0   ;;  %s678_s13 = smov 64  }
  0x1a   :  { %486 = vmatpush.msk.msra.mxu0 %vm124_vm0, %v113_v3  ;;  %v107_v5 = vld [vmem:[#allocation7 + $0x8] sm:$0xff]  ;;  %v754_v8 = vld [vmem:[#allocation9] ss:$0 sm:$0xff]  ;;  %s679_s14 = smov 32   ;;  %v298_v36 = vld [vmem:[#allocation10 + $0x10] sm:$0xff]  ;;  %vm154_vm6 = vcmask 261120  }
  0x1b   :  { %487 = vmatmul.msk.f32.vlgmr.msra.gmra.mxu0 %vm117_vm1, %v111_v4  ;;  %171 = vmatpush.msra.mxu1 %v108_v2  ;;  %v299_v35 = vld [vmem:[#allocation10 + $0x18] sm:$0xff]  ;;  %v297_v38 = vld [vmem:[#allocation10 + $0x8] sm:$0xff]  ;;  %v296_v39 = vld [vmem:[#allocation10] sm:$0xff] }
  0x1c   :  { %238 = vmatpush.msra.mxu2 %v108_v2  ;;  %v112_v37 = vld [vmem:[%s811_s0 + $0x8] sm:$0xff]  ;;  %321 = vmatpush.msra.mxu3 %v299_v35  ;;  %v292_v40 = vld [vmem:[%s816_s5 + $0x18] sm:$0xff]  ;;  %v291_v41 = vld [vmem:[%s816_s5 + $0x10] sm:$0xff] }
  0x1d   :  { %172 = vmatpush.msra.mxu1 %v107_v5  ;;  %v290_v42 = vld [vmem:[%s816_s5 + $0x8] sm:$0xff]  ;;  %v289_v43 = vld [vmem:[%s816_s5] sm:$0xff] }
  0x1e   :  { %239 = vmatpush.msra.mxu2 %v107_v5  ;;  %322 = vmatpush.msra.mxu3 %v298_v36  ;;  %v788_v50 = vld [vmem:[%s817_s6] ss:$0 sm:$0xff]  ;;  %s680_s6 = smov 96  }
  0x1f   :  { %173 = vmatpush.msra.mxu1 %v106_v6 }
  0x20   :  { %174 = vmatmul.f32.vlgmr.msra.gmra.mxu1 %v677_v7  ;;  %240 = vmatpush.msra.mxu2 %v106_v6 }
  0x21   :  { %323 = vmatpush.msra.mxu3 %v297_v38  ;;  %347 = vmatpush.msrb.mxu1 %v292_v40 }
  0x22   :  { %411 = vmatpush.msrb.mxu2 %v292_v40 }
  0x23   :  { %488 = vmatmul.msk.f32.gmra.mxu0 %vm117_vm1, %v112_v37  ;;  %324 = vmatpush.msra.mxu3 %v296_v39 }
  0x24   :  { %348 = vmatpush.msrb.mxu1 %v291_v41  ;;  %412 = vmatpush.msrb.mxu2 %v291_v41 }
  0x26   :  { %349 = vmatpush.msrb.mxu1 %v290_v42  ;;  %413 = vmatpush.msrb.mxu2 %v290_v42 }
  0x28   :  { %350 = vmatpush.msrb.mxu1 %v289_v43  ;;  %414 = vmatpush.msrb.mxu2 %v289_v43 }
  0x29   :  { %351 = vmatmul.f32.vlgmr.msrb.gmra.mxu1 %v677_v7 }
  0x98   :  { %v145_v9 = vpop.f32.mrf.mxu0 }
  0x99   :  { %v146_v10 = vadd.f32 %v754_v8, %v145_v9 }
  0x9d   :  { %v175_v11 = vpop.f32.mrf.mxu1 }
  0x9e   :  { %v178_v12 = vadd.f32 %v175_v11, %v146_v10 }
  0xa0   :  { %512 = vtanh.f32 %v178_v12  ;;  %v489_v14 = vmul.f32 -1.442695, %v178_v12  ;;  %v148_v46 = vpop.f32.mrf.mxu0 }
  0xa1   :  { %v149_v47 = vadd.f32 %v754_v8, %v148_v46  ;;  %v510_v46 = vld [vmem:[#allocation12] ss:$0 sm:$0xff] }
  0xa2   :  { %514 = vpow2.f32 %v489_v14 }
  0xa6   :  { %v513_v13 = vpop.eup %512  ;;  %v352_v52 = vpop.f32.mrf.mxu1 }
  0xa7   :  { %201 = vrot.lane.b32.xlu0 %v513_v13, %s678_s13 }
  0xa8   :  { %v515_v15 = vpop.eup %514 }
  0xa9   :  { %v182_v16 = vadd.f32 1.0, %v515_v15 }
  0xab   :  { %516 = vrcp.f32 %v182_v16  ;;  %v194_v22 = vand.u32 2147483648, %v182_v16  ;;  %vm188_vm3 = vweird.f32 %v182_v16  ;;  %v192_v23 = vand.u32 2147483647, %v182_v16 }
  0xad   :  { %v195_v25 = vor.u32 1.1754944e-38, %v194_v22  ;;  %vm193_vm5 = vcmp.eq.f32.partialorder %v192_v23, 8.507059e+37 }
  0xb1   :  { %v517_v17 = vpop.eup %516 }
  0xb2   :  { %v184_v18 = vmul.f32 %v517_v17, %v182_v16  ;;  %vm189_vm2 = vweird.f32 %v517_v17 }
  0xb3   :  { %vm190_vm4 = vmor %vm188_vm3, %vm189_vm2  ;;  %vm468_vm3 = vcmask 261126  }
  0xb4   :  { %v185_v19 = vsub.f32 1.0, %v184_v18 }
  0xb6   :  { %v186_v20 = vmul.f32 %v517_v17, %v185_v19 }
  0xb8   :  { %v187_v21 = vadd.f32 %v517_v17, %v186_v20 }
  0xba   :  { %v191_v24 = vsel %vm190_vm4, %v517_v17, %v187_v21  ;;  %vm477_vm4 = vcmask 7174  }
  0xbb   :  { %v196_v27 = vsel %vm193_vm5, %v195_v25, %v191_v24 }
  0xbc   :  { %v199_v29 = vmul.f32 0.0, %v196_v27 }
 0x119   :  { %v202_v26 = vpop.permute.xlu0 %201 }
 0x11a   :  { %v204_v28 = vmul.f32 %v202_v26, %v196_v27 }
 0x11c   :  { %206 = vrot.lane.b32.xlu0 %v204_v28, %s679_s14 }
 0x18e   :  { %v207_v30 = vpop.permute.xlu0 %206 }
 0x18f   :  { %v759_v31 = vadd.f32 %v207_v30, %v199_v29 }
 0x191   :  { %518 = vtanh.f32 %v759_v31 }
 0x197   :  { %v519_v32 = vpop.eup %518 }
 0x198   :  { %212 = vrot.lane.b32.xlu1 %v519_v32, %s678_s13 }
 0x20a   :  { %v213_v33 = vpop.permute.xlu1 %212 }
 0x20b   :  { %v215_v34 = vmul.f32 %v213_v33, %v196_v27 }
 0x20d   :  { %217 = vrot.lane.b32.xlu1 %v215_v34, %s679_s14 }
 0x27f   :  { %v218_v44 = vpop.permute.xlu1 %217 }
 0x280   :  { %220 = vst.msk [vmem:[#allocation2] sm:$0xff] %vm154_vm6, %v218_v44  ;;  %490 = vmatmul.msk.f32.vlgmr.msra.gmra.mxu2 %vm154_vm6, %v218_v44 }
 0x287   :  { %v294_v45 = vld [vmem:[#allocation2] sm:$0xff] }
 0x288   :  { %492 = vmatmul.msk.f32.vlgmr.msra.gmra.mxu3 %vm154_vm6, %v294_v45 }
 0x303   :  { %v242_v48 = vpop.f32.mrf.mxu2 }
 0x304   :  { %v245_v49 = vadd.f32 %v242_v48, %v149_v47 }
 0x306   :  { %520 = vtanh.f32 %v245_v49  ;;  %v491_v57 = vmul.f32 -1.442695, %v245_v49 }
 0x30b   :  { %v326_v51 = vpop.f32.mrf.mxu3 }
 0x30c   :  { %v521_v53 = vpop.eup %520  ;;  %v327_v54 = vadd.f32 %v788_v50, %v326_v51 }
 0x30d   :  { %268 = vrot.lane.b32.xlu2 %v521_v53, %s678_s13 }
 0x30e   :  { %v355_v55 = vadd.f32 %v352_v52, %v327_v54 }
 0x310   :  { %522 = vtanh.f32 %v355_v55  ;;  %v494_v59 = vmul.f32 -1.442695, %v355_v55 }
 0x311   :  { %524 = vpow2.f32 %v491_v57 }
 0x312   :  { %526 = vpow2.f32 %v494_v59 }
 0x316   :  { %v523_v56 = vpop.eup %522 }
 0x317   :  { %378 = vrot.lane.b32.xlu2 %v523_v56, %s678_s13  ;;  %v525_v58 = vpop.eup %524 }
 0x318   :  { %v249_v60 = vadd.f32 1.0, %v525_v58  ;;  %v527_v61 = vpop.eup %526 }
 0x319   :  { %v359_v63 = vadd.f32 1.0, %v527_v61 }
 0x31a   :  { %528 = vrcp.f32 %v249_v60  ;;  %v261_v6 = vand.u32 2147483648, %v249_v60  ;;  %vm255_vm8 = vweird.f32 %v249_v60  ;;  %v259_v7 = vand.u32 2147483647, %v249_v60 }
 0x31b   :  { %530 = vrcp.f32 %v359_v63  ;;  %v371_v16 = vand.u32 2147483648, %v359_v63  ;;  %vm365_vm12 = vweird.f32 %v359_v63  ;;  %v369_v17 = vand.u32 2147483647, %v359_v63 }
 0x31c   :  { %v262_v10 = vor.u32 1.1754944e-38, %v261_v6  ;;  %vm260_vm10 = vcmp.eq.f32.partialorder %v259_v7, 8.507059e+37 }
 0x31d   :  { %v372_v19 = vor.u32 1.1754944e-38, %v371_v16  ;;  %vm370_vm14 = vcmp.eq.f32.partialorder %v369_v17, 8.507059e+37 }
 0x320   :  { %v529_v62 = vpop.eup %528 }
 0x321   :  { %v251_v0 = vmul.f32 %v529_v62, %v249_v60  ;;  %v531_v2 = vpop.eup %530  ;;  %vm256_vm7 = vweird.f32 %v529_v62 }
 0x322   :  { %v361_v4 = vmul.f32 %v531_v2, %v359_v63  ;;  %vm257_vm9 = vmor %vm255_vm8, %vm256_vm7  ;;  %vm366_vm11 = vweird.f32 %v531_v2 }
 0x323   :  { %v252_v1 = vsub.f32 1.0, %v251_v0  ;;  %vm367_vm13 = vmor %vm365_vm12, %vm366_vm11 }
 0x324   :  { %v362_v8 = vsub.f32 1.0, %v361_v4 }
 0x325   :  { %v253_v3 = vmul.f32 %v529_v62, %v252_v1 }
 0x326   :  { %v363_v11 = vmul.f32 %v531_v2, %v362_v8 }
 0x327   :  { %v254_v5 = vadd.f32 %v529_v62, %v253_v3 }
 0x328   :  { %v364_v15 = vadd.f32 %v531_v2, %v363_v11 }
 0x329   :  { %v258_v9 = vsel %vm257_vm9, %v529_v62, %v254_v5  ;;  %v511_v5 = vld [vmem:[#allocation4] ss:$0 sm:$0xff] }
 0x32a   :  { %v263_v13 = vsel %vm260_vm10, %v262_v10, %v258_v9  ;;  %v368_v18 = vsel %vm367_vm13, %v531_v2, %v364_v15 }
 0x32b   :  { %v373_v21 = vsel %vm370_vm14, %v372_v19, %v368_v18  ;;  %v266_v23 = vmul.f32 %v263_v13, %v759_v31 }
 0x32c   :  { %v376_v27 = vmul.f32 0.0, %v373_v21 }
 0x367   :  { %v269_v12 = vpop.permute.xlu2 %268 }
 0x368   :  { %v271_v14 = vmul.f32 %v269_v12, %v263_v13 }
 0x36a   :  { %273 = vrot.lane.b32.xlu0 %v271_v14, %s679_s14 }
 0x371   :  { %v379_v20 = vpop.permute.xlu2 %378 }
 0x372   :  { %v381_v22 = vmul.f32 %v379_v20, %v373_v21 }
 0x374   :  { %383 = vrot.lane.b32.xlu1 %v381_v22, %s679_s14 }
 0x3dc   :  { %v274_v24 = vpop.permute.xlu0 %273 }
 0x3dd   :  { %v276_v25 = vadd.f32 %v274_v24, %v266_v23 }
 0x3df   :  { %532 = vtanh.f32 %v276_v25 }
 0x3e5   :  { %v533_v26 = vpop.eup %532 }
 0x3e6   :  { %279 = vrot.lane.b32.xlu2 %v533_v26, %s678_s13  ;;  %v384_v28 = vpop.permute.xlu1 %383 }
 0x3e7   :  { %v386_v29 = vadd.f32 %v384_v28, %v376_v27 }
 0x3e9   :  { %534 = vtanh.f32 %v386_v29 }
 0x3ef   :  { %v535_v30 = vpop.eup %534 }
 0x3f0   :  { %389 = vrot.lane.b32.xlu0 %v535_v30, %s678_s13 }
 0x440   :  { %v280_v32 = vpop.permute.xlu2 %279 }
 0x441   :  { %v282_v33 = vmul.f32 %v280_v32, %v263_v13 }
 0x443   :  { %284 = vrot.lane.b32.xlu1 %v282_v33, %s679_s14 }
 0x462   :  { %v390_v34 = vpop.permute.xlu0 %389 }
 0x463   :  { %v392_v35 = vmul.f32 %v390_v34, %v373_v21 }
 0x465   :  { %395 = vrot.lane.b32.xlu2 %v392_v35, %s679_s14 }
 0x4b5   :  { %v285_v31 = vpop.permute.xlu1 %284 }
 0x4b6   :  { %288 = vst.msk [vmem:[#allocation2 + $0x8] sm:$0xff] %vm154_vm6, %v285_v31 }
 0x4bd   :  { %v295_v36 = vld [vmem:[#allocation2 + $0x8] sm:$0xff] }
 0x4be   :  { %493 = vmatmul.msk.f32.gmra.mxu3 %vm154_vm6, %v295_v36 }
 0x4bf   :  { %v396_v37 = vpop.permute.xlu2 %395 }
 0x4c0   :  { %495 = vmatmul.msk.f32.vlgmr.msrb.gmra.mxu2 %vm154_vm6, %v396_v37 }
 0x541   :  { %v329_v38 = vpop.f32.mrf.mxu3 }
 0x542   :  { %v330_v39 = vadd.f32 %v788_v50, %v329_v38 }
 0x543   :  { %v416_v40 = vpop.f32.mrf.mxu2 }
 0x544   :  { %v419_v41 = vadd.f32 %v416_v40, %v330_v39 }
 0x546   :  { %536 = vtanh.f32 %v419_v41  ;;  %v496_v43 = vmul.f32 -1.442695, %v419_v41 }
 0x548   :  { %538 = vpow2.f32 %v496_v43 }
 0x54c   :  { %v537_v42 = vpop.eup %536 }
 0x54d   :  { %442 = vrot.lane.b32.xlu0 %v537_v42, %s678_s13 }
 0x54e   :  { %v539_v44 = vpop.eup %538 }
 0x54f   :  { %v423_v45 = vadd.f32 1.0, %v539_v44 }
 0x551   :  { %540 = vrcp.f32 %v423_v45  ;;  %v435_v50 = vand.u32 2147483648, %v423_v45  ;;  %vm429_vm0 = vweird.f32 %v423_v45  ;;  %v433_v53 = vand.u32 2147483647, %v423_v45 }
 0x553   :  { %v436_v55 = vor.u32 1.1754944e-38, %v435_v50  ;;  %vm434_vm2 = vcmp.eq.f32.partialorder %v433_v53, 8.507059e+37 }
 0x555   :  { %460 = vrot.lane.b32.xlu0 %v510_v46, %s680_s6 }
 0x557   :  { %v541_v47 = vpop.eup %540 }
 0x558   :  { %v425_v48 = vmul.f32 %v541_v47, %v423_v45  ;;  %vm430_vm15 = vweird.f32 %v541_v47 }
 0x559   :  { %vm431_vm1 = vmor %vm429_vm0, %vm430_vm15 }
 0x55a   :  { %v426_v49 = vsub.f32 1.0, %v425_v48 }
 0x55c   :  { %v427_v51 = vmul.f32 %v541_v47, %v426_v49 }
 0x55e   :  { %v428_v52 = vadd.f32 %v541_v47, %v427_v51 }
 0x560   :  { %v432_v54 = vsel %vm431_vm1, %v541_v47, %v428_v52 }
 0x561   :  { %v437_v57 = vsel %vm434_vm2, %v436_v55, %v432_v54 }
 0x562   :  { %v440_v59 = vmul.f32 %v437_v57, %v386_v29 }
 0x5bf   :  { %v443_v56 = vpop.permute.xlu0 %442 }
 0x5c0   :  { %v445_v58 = vmul.f32 %v443_v56, %v437_v57 }
 0x5c2   :  { %447 = vrot.lane.b32.xlu1 %v445_v58, %s679_s14 }
 0x5c7   :  { %v461_v0 = vpop.permute.xlu0 %460 }
 0x634   :  { %v448_v60 = vpop.permute.xlu1 %447 }
 0x635   :  { %v450_v61 = vadd.f32 %v448_v60, %v440_v59 }
 0x637   :  { %542 = vtanh.f32 %v450_v61 }
 0x63d   :  { %v543_v62 = vpop.eup %542 }
 0x63e   :  { %453 = vrot.lane.b32.xlu2 %v543_v62, %s678_s13 }
 0x698   :  { %v454_v63 = vpop.permute.xlu2 %453 }
 0x699   :  { %v456_v1 = vmul.f32 %v454_v63, %v437_v57 }
 0x69b   :  { %v463_v2 = vmul.f32 %v461_v0, %v456_v1 }
 0x69d   :  { %465 = vrot.lane.b32.xlu1 %v463_v2, %s679_s14 }
 0x70f   :  { %v466_v3 = vpop.permute.xlu1 %465 }
 0x710   :  { %v469_v4 = vsel %vm468_vm3, %v466_v3, 0.0 }
 0x711   :  { %470 = vadd.xlane.f32.xlu2 %v469_v4 }
 0x784   :  { %v471_v6 = vpop.xlane.xlu2 %470 }
 0x785   :  { %v476_v7 = vadd.f32 %v511_v5, %v471_v6 }
 0x787   :  { %478 = vst.msk [vmem:[%s820_s9 - $0x6] sm:$0xc0] %vm477_vm4, %v476_v7 }
 0x788   :  { %483 = vsyncpa [#allocation6], 1 }
 0x789   :  { %484 = vsyncpa [#allocation8], 1 }
 0x78a   :  { %485 = vsyncpa [#allocation11], 1 }

</bundles_post_ra>
